<compile_context>
chip_gen: v7x
topology: tpu7x:2x2x1
jax: 0.10.0
libtpu: 0.0.40
codegen_flags: <defaults>
</compile_context>

<pallas_src>
import jax
import jax.numpy as jnp
from jax.experimental import pallas as pl
from jax.experimental.pallas import tpu as pltpu


def _transcoder_kernel(x_ref, wenc_ref, benc_ref, wdec_ref, bdec_ref, out_ref, acc_ref):
    """One (layer, M-tile, F-tile) step of the fused encode -> ReLU -> decode.

    x_ref    : (1, TM, D)  bf16   activation tile (constant over the F axis)
    wenc_ref : (1, D, TF)  bf16   encoder weight slab for this F tile
    benc_ref : (1, 1, TF)  f32    encoder bias slice
    wdec_ref : (1, TF, D)  bf16   decoder weight slab for this F tile
    bdec_ref : (1, 1, D)   f32    decoder bias (constant over M and F axes)
    out_ref  : (1, TM, D)  f32    reconstruction tile (written at the last F step)
    acc_ref  : (TM, D)     f32    VMEM scratch accumulator
    """
    f = pl.program_id(2)

    @pl.when(f == 0)
    def _init():
        # Fold the decoder bias into the accumulator once per (layer, M-tile).
        acc_ref[...] = jnp.broadcast_to(bdec_ref[0], acc_ref.shape)

    # Encode + ReLU for this F tile (MXU matmul with f32 accumulation; epilogue in f32).
    pre = jnp.dot(x_ref[0], wenc_ref[0], preferred_element_type=jnp.float32)   # (TM, TF)
    feats = jnp.maximum(pre + benc_ref[0], 0.0)                                # (TM, TF) f32

    # Decode this F tile and accumulate into the f32 reconstruction accumulator.
    acc_ref[...] += jnp.dot(feats.astype(wdec_ref.dtype), wdec_ref[0],
                            preferred_element_type=jnp.float32)                # (TM, D)

    @pl.when(f == pl.num_programs(2) - 1)
    def _finalize():
        out_ref[0] = acc_ref[...].astype(out_ref.dtype)


def _pick_feature_tile(F, target):
    """Largest multiple of 128 <= target that divides F; fall back to the full F axis."""
    if F <= target:
        return F
    start = (target // 128) * 128
    for cand in range(start, 0, -128):
        if F % cand == 0:
            return cand
    # TODO(synk): pad F (weights + biases) to a multiple of 128 for awkward real-model sizes.
    return F


def transcoder_forward_stacked(x_all, w_enc, b_enc, w_dec, b_dec, *, tm=256, tf=512):
    """Fused transcoder over all layers.

    x_all : (L, M, D) f32   (M = batch * seq)
    w_enc : (L, D, F) bf16 ; b_enc : (L, F) f32
    w_dec : (L, F, D) bf16 ; b_dec : (L, D) f32
    returns (L, M, D) f32 reconstructions.
    """
    L, M, D = x_all.shape
    F = w_enc.shape[-1]

    # --- tile selection -------------------------------------------------------
    tf = _pick_feature_tile(F, tf)
    tm = min(tm, M)
    if tm < M:
        tm = max(8, (tm // 8) * 8)            # sublane-aligned M tiles
    num_m = pl.cdiv(M, tm)
    m_pad = num_m * tm
    num_f = F // tf

    x_bf16 = x_all.astype(jnp.bfloat16)
    if m_pad != M:
        x_bf16 = jnp.pad(x_bf16, ((0, 0), (0, m_pad - M), (0, 0)))

    b_enc3 = b_enc.reshape(L, 1, F).astype(jnp.float32)
    b_dec3 = b_dec.reshape(L, 1, D).astype(jnp.float32)

    cost = pl.CostEstimate(
        flops=int(4 * L * m_pad * D * F),
        transcendentals=0,
        bytes_accessed=int(
            x_bf16.size * 2                               # activations (read once per (l, m))
            + (w_enc.size + w_dec.size) * 2 * num_m       # weights re-streamed per M tile
            + (b_enc.size + b_dec.size) * 4
            + L * m_pad * D * 4                           # f32 output
        ),
    )

    recon = pl.pallas_call(
        _transcoder_kernel,
        out_shape=jax.ShapeDtypeStruct((L, m_pad, D), jnp.float32),
        grid_spec=pltpu.PrefetchScalarGridSpec(
            num_scalar_prefetch=0,
            grid=(L, num_m, num_f),
            in_specs=[
                pl.BlockSpec((1, tm, D), lambda l, m, f: (l, m, 0)),   # x tile (const over f)
                pl.BlockSpec((1, D, tf), lambda l, m, f: (l, 0, f)),   # W_enc F-slab
                pl.BlockSpec((1, 1, tf), lambda l, m, f: (l, 0, f)),   # b_enc slice
                pl.BlockSpec((1, tf, D), lambda l, m, f: (l, f, 0)),   # W_dec F-slab
                pl.BlockSpec((1, 1, D), lambda l, m, f: (l, 0, 0)),    # b_dec (const over m, f)
            ],
            out_specs=pl.BlockSpec((1, tm, D), lambda l, m, f: (l, m, 0)),
            scratch_shapes=[pltpu.VMEM((tm, D), jnp.float32)],
        ),
        compiler_params=pltpu.CompilerParams(
            dimension_semantics=("parallel", "parallel", "arbitrary"),
            vmem_limit_bytes=64 * 1024 * 1024,
        ),
        cost_estimate=cost,
    )(x_bf16, w_enc, b_enc3, w_dec, b_dec3)

    if m_pad != M:
        recon = recon[:, :M, :]
    return recon


class PallasTranscoder:
    """Concrete transcoder matching the BaseTranscoder interface (forward/encode/decode)."""

    def __init__(self, num_layers, d_model, num_features, key, *, tm=256, tf=512):
        self.num_layers = num_layers
        self.d_model = d_model
        self.num_features = num_features
        self.tm = tm
        self.tf = tf
        k1, k2, k3, k4 = jax.random.split(key, 4)
        scale_e = 1.0 / jnp.sqrt(d_model)
        scale_d = 1.0 / jnp.sqrt(num_features)
        # Weights stored in bf16 (MXU-native, half the HBM traffic); biases in f32.
        self.w_enc = (jax.random.normal(k1, (num_layers, d_model, num_features), jnp.float32)
                      * scale_e).astype(jnp.bfloat16)
        self.w_dec = (jax.random.normal(k2, (num_layers, num_features, d_model), jnp.float32)
                      * scale_d).astype(jnp.bfloat16)
        self.b_enc = 0.01 * jax.random.normal(k3, (num_layers, num_features), jnp.float32)
        self.b_dec = 0.01 * jax.random.normal(k4, (num_layers, d_model), jnp.float32)

    def forward(self, inputs):
        """inputs: dict{layer: [batch, seq, d_model]} -> dict{layer: [batch, seq, d_model]}"""
        layer_ids = sorted(inputs.keys())
        b, s, d = inputs[layer_ids[0]].shape
        x_all = jnp.stack([inputs[l].reshape(b * s, d) for l in layer_ids], axis=0)
        if layer_ids == list(range(self.num_layers)):
            # All layers requested: pass stored params directly, no HBM weight gather.
            w_enc, b_enc, w_dec, b_dec = self.w_enc, self.b_enc, self.w_dec, self.b_dec
        else:
            idx = jnp.asarray(layer_ids)
            w_enc, b_enc = self.w_enc[idx], self.b_enc[idx]
            w_dec, b_dec = self.w_dec[idx], self.b_dec[idx]
        recon = transcoder_forward_stacked(x_all, w_enc, b_enc, w_dec, b_dec,
                                           tm=self.tm, tf=self.tf)
        return {l: recon[i].reshape(b, s, d) for i, l in enumerate(layer_ids)}

    # Pure-JAX references (same bf16-weight / f32-accumulate numerics) for checking.
    def encode_ref(self, x, layer_idx):
        pre = jnp.dot(x.astype(jnp.bfloat16), self.w_enc[layer_idx],
                      preferred_element_type=jnp.float32) + self.b_enc[layer_idx]
        return jnp.maximum(pre, 0.0)

    def decode_ref(self, a, layer_idx):
        return jnp.dot(a[layer_idx].astype(jnp.bfloat16), self.w_dec[layer_idx],
                       preferred_element_type=jnp.float32) + self.b_dec[layer_idx]


if __name__ == "__main__":
    key = jax.random.PRNGKey(0)
    k_param, k_x = jax.random.split(key)

    # Small but tile-exercising shapes: grid = (L=2, M/TM=2, F/TF=2); D lane-dense (128).
    num_layers, batch, seq, d_model, num_features = 2, 2, 8, 128, 256
    model = PallasTranscoder(num_layers, d_model, num_features, k_param, tm=8, tf=128)

    xs = jax.random.normal(k_x, (num_layers, batch, seq, d_model), jnp.float32)
    inputs = {l: xs[l] for l in range(num_layers)}

    outputs = model.forward(inputs)
    outputs = {l: jax.block_until_ready(v) for l, v in outputs.items()}

    # Cross-check against the pure-JAX encode/decode reference.
    for l in range(num_layers):
        feats = model.encode_ref(inputs[l].reshape(-1, d_model), l)
        ref = model.decode_ref({l: feats}, l).reshape(batch, seq, d_model)
        assert outputs[l].shape == (batch, seq, d_model)
        assert jnp.allclose(outputs[l], ref, atol=1e-2, rtol=1e-2), f"mismatch at layer {l}"

    print("KERNEL_OK")
</pallas_src>

<mosaic_0001>
module attributes {stable_mosaic.version = 11 : i64} {
  func.func @_transcoder_kernel(%arg0: i32, %arg1: i32, %arg2: i32, %arg3: memref<1x8x128xbf16, #tpu.memory_space<vmem>>, %arg4: memref<1x128x128xbf16, #tpu.memory_space<vmem>>, %arg5: memref<1x1x128xf32, #tpu.memory_space<vmem>>, %arg6: memref<1x128x128xbf16, #tpu.memory_space<vmem>>, %arg7: memref<1x1x128xf32, #tpu.memory_space<vmem>>, %arg8: memref<1x8x128xf32, #tpu.memory_space<vmem>>, %arg9: memref<8x128xf32, #tpu.memory_space<vmem>>) attributes {dimension_semantics = [#tpu.dimension_semantics<parallel>, #tpu.dimension_semantics<parallel>, #tpu.dimension_semantics<arbitrary>], iteration_bounds = array<i64: 2, 2, 2>, scalar_prefetch = 0 : i64, scratch_operands = 1 : i64, tpu.core_type = #tpu.core_type<tc>, window_params = [{transform_indices = @transform_0, window_bounds = array<i64: 1, 8, 128>}, {transform_indices = @transform_1, window_bounds = array<i64: 1, 128, 128>}, {transform_indices = @transform_2, window_bounds = array<i64: 1, 1, 128>}, {transform_indices = @transform_3, window_bounds = array<i64: 1, 128, 128>}, {transform_indices = @transform_4, window_bounds = array<i64: 1, 1, 128>}, {transform_indices = @transform_5, window_bounds = array<i64: 1, 8, 128>}]} {
    %c0_i32 = arith.constant 0 : i32
    %0 = arith.cmpi eq, %arg2, %c0_i32 : i32
    %1 = arith.extui %0 : i1 to i32
    %c0_i32_0 = arith.constant 0 : i32
    %2 = arith.cmpi ne, %1, %c0_i32_0 : i32
    scf.if %2 {
      %c0_19 = arith.constant 0 : index
      %c0_20 = arith.constant 0 : index
      %c0_21 = arith.constant 0 : index
      %24 = vector.load %arg7[%c0_19, %c0_20, %c0_21] : memref<1x1x128xf32, #tpu.memory_space<vmem>>, vector<1x1x128xf32>
      %25 = vector.shape_cast %24 : vector<1x1x128xf32> to vector<1x128xf32>
      %26 = vector.shape_cast %25 : vector<1x128xf32> to vector<1x128xf32>
      %27 = vector.broadcast %26 : vector<1x128xf32> to vector<8x128xf32>
      %c0_22 = arith.constant 0 : index
      %c0_23 = arith.constant 0 : index
      %28 = vector.load %arg9[%c0_22, %c0_23] : memref<8x128xf32, #tpu.memory_space<vmem>>, vector<8x128xf32>
      tpu.vector_store %arg9[%c0_22, %c0_23], %27 {strides = array<i32>} : memref<8x128xf32, #tpu.memory_space<vmem>>, vector<8x128xf32>,
    } else {
    }
    %c0 = arith.constant 0 : index
    %c0_1 = arith.constant 0 : index
    %c0_2 = arith.constant 0 : index
    %3 = vector.load %arg3[%c0, %c0_1, %c0_2] : memref<1x8x128xbf16, #tpu.memory_space<vmem>>, vector<1x8x128xbf16>
    %4 = vector.shape_cast %3 : vector<1x8x128xbf16> to vector<8x128xbf16>
    %c0_3 = arith.constant 0 : index
    %c0_4 = arith.constant 0 : index
    %c0_5 = arith.constant 0 : index
    %5 = vector.load %arg4[%c0_3, %c0_4, %c0_5] : memref<1x128x128xbf16, #tpu.memory_space<vmem>>, vector<1x128x128xbf16>
    %6 = vector.shape_cast %5 : vector<1x128x128xbf16> to vector<128x128xbf16>
    %cst = arith.constant dense<0.000000e+00> : vector<8x128xf32>
    %7 = tpu.matmul %4, %6, %cst {dimension_numbers = #tpu.dot_dimension_numbers<[1], [0], [0], [1], [0, 0, 1, 1], [], []>} : vector<8x128xbf16>, vector<128x128xbf16>, vector<8x128xf32> -> vector<8x128xf32>
    %c0_6 = arith.constant 0 : index
    %c0_7 = arith.constant 0 : index
    %c0_8 = arith.constant 0 : index
    %8 = vector.load %arg5[%c0_6, %c0_7, %c0_8] : memref<1x1x128xf32, #tpu.memory_space<vmem>>, vector<1x1x128xf32>
    %9 = vector.shape_cast %8 : vector<1x1x128xf32> to vector<1x128xf32>
    %10 = vector.broadcast %9 : vector<1x128xf32> to vector<8x128xf32>
    %11 = arith.addf %7, %10 : vector<8x128xf32>
    %cst_9 = arith.constant 0.000000e+00 : f32
    %12 = vector.broadcast %cst_9 : f32 to vector<8x128xf32>
    %13 = arith.maximumf %11, %12 : vector<8x128xf32>
    %c0_10 = arith.constant 0 : index
    %c0_11 = arith.constant 0 : index
    %14 = vector.load %arg9[%c0_10, %c0_11] : memref<8x128xf32, #tpu.memory_space<vmem>>, vector<8x128xf32>
    %15 = arith.truncf %13 : vector<8x128xf32> to vector<8x128xbf16>
    %c0_12 = arith.constant 0 : index
    %c0_13 = arith.constant 0 : index
    %c0_14 = arith.constant 0 : index
    %16 = vector.load %arg6[%c0_12, %c0_13, %c0_14] : memref<1x128x128xbf16, #tpu.memory_space<vmem>>, vector<1x128x128xbf16>
    %17 = vector.shape_cast %16 : vector<1x128x128xbf16> to vector<128x128xbf16>
    %cst_15 = arith.constant dense<0.000000e+00> : vector<8x128xf32>
    %18 = tpu.matmul %15, %17, %cst_15 {dimension_numbers = #tpu.dot_dimension_numbers<[1], [0], [0], [1], [0, 0, 1, 1], [], []>} : vector<8x128xbf16>, vector<128x128xbf16>, vector<8x128xf32> -> vector<8x128xf32>
    %19 = arith.addf %14, %18 : vector<8x128xf32>
    %c0_16 = arith.constant 0 : index
    %c0_17 = arith.constant 0 : index
    %20 = vector.load %arg9[%c0_16, %c0_17] : memref<8x128xf32, #tpu.memory_space<vmem>>, vector<8x128xf32>
    tpu.vector_store %arg9[%c0_16, %c0_17], %19 {strides = array<i32>} : memref<8x128xf32, #tpu.memory_space<vmem>>, vector<8x128xf32>,
    %c1_i32 = arith.constant 1 : i32
    %21 = arith.cmpi eq, %arg2, %c1_i32 : i32
    %22 = arith.extui %21 : i1 to i32
    %c0_i32_18 = arith.constant 0 : i32
    %23 = arith.cmpi ne, %22, %c0_i32_18 : i32
    scf.if %23 {
      %c0_19 = arith.constant 0 : index
      %c0_20 = arith.constant 0 : index
      %24 = vector.load %arg9[%c0_19, %c0_20] : memref<8x128xf32, #tpu.memory_space<vmem>>, vector<8x128xf32>
      %c0_21 = arith.constant 0 : index
      %c0_22 = arith.constant 0 : index
      %c0_23 = arith.constant 0 : index
      %25 = vector.load %arg8[%c0_21, %c0_22, %c0_23] : memref<1x8x128xf32, #tpu.memory_space<vmem>>, vector<1x8x128xf32>
      %26 = vector.shape_cast %25 : vector<1x8x128xf32> to vector<8x128xf32>
      %27 = vector.shape_cast %24 : vector<8x128xf32> to vector<1x8x128xf32>
      tpu.vector_store %arg8[%c0_21, %c0_22, %c0_23], %27 {strides = array<i32>} : memref<1x8x128xf32, #tpu.memory_space<vmem>>, vector<1x8x128xf32>,
    } else {
    }
    return
  }
  func.func @transform_0(%arg0: i32, %arg1: i32, %arg2: i32) -> (i32, i32, i32) {
    %c0_i32 = arith.constant 0 : i32
    %c0_i32_0 = arith.constant 0 : i32
    return %arg0, %arg1, %c0_i32 : i32, i32, i32
  }
  func.func @transform_1(%arg0: i32, %arg1: i32, %arg2: i32) -> (i32, i32, i32) {
    %c0_i32 = arith.constant 0 : i32
    %c0_i32_0 = arith.constant 0 : i32
    return %arg0, %c0_i32, %arg2 : i32, i32, i32
  }
  func.func @transform_2(%arg0: i32, %arg1: i32, %arg2: i32) -> (i32, i32, i32) {
    %c0_i32 = arith.constant 0 : i32
    %c0_i32_0 = arith.constant 0 : i32
    return %arg0, %c0_i32, %arg2 : i32, i32, i32
  }
  func.func @transform_3(%arg0: i32, %arg1: i32, %arg2: i32) -> (i32, i32, i32) {
    %c0_i32 = arith.constant 0 : i32
    %c0_i32_0 = arith.constant 0 : i32
    return %arg0, %arg2, %c0_i32 : i32, i32, i32
  }
  func.func @transform_4(%arg0: i32, %arg1: i32, %arg2: i32) -> (i32, i32, i32) {
    %c0_i32 = arith.constant 0 : i32
    %c0_i32_0 = arith.constant 0 : i32
    %c0_i32_1 = arith.constant 0 : i32
    return %arg0, %c0_i32, %c0_i32_0 : i32, i32, i32
  }
  func.func @transform_5(%arg0: i32, %arg1: i32, %arg2: i32) -> (i32, i32, i32) {
    %c0_i32 = arith.constant 0 : i32
    %c0_i32_0 = arith.constant 0 : i32
    return %arg0, %arg1, %c0_i32 : i32, i32, i32
  }
}

</mosaic_0001>

<bundles_post_ra>
// kernel: tpu_custom_call.1
= control target key start
LH: loop header
LB: loop body
LE: loop exit
PB: predicated region body
PF: predicated region fallthrough
CT: control target
= control target key end

     0   :  { %s2048_s0 = inlined_call_operand.hbm [shape: bf16[2,16,128], index: 0, kind: input, shape index: {}]   ;;  %s2049_s1 = inlined_call_operand.hbm [shape: bf16[2,128,256], index: 1, kind: input, shape index: {}]   ;;  %s2050_s2 = inlined_call_operand.hbm [shape: f32[2,1,256], index: 2, kind: input, shape index: {}]   ;;  %s2051_s3 = inlined_call_operand.hbm [shape: bf16[2,256,128], index: 3, kind: input, shape index: {}]   ;;  %s2052_s4 = inlined_call_operand.hbm [shape: f32[2,1,128], index: 4, kind: input, shape index: {}]   ;;  %s2053_s5 = inlined_call_operand.hbm [shape: f32[2,16,128], index: 5, kind: output, shape index: {}]  }
   0x1   :  { %2081 = sst [smem:[#allocation33_spill]] %s2048_s0 }
   0x2   :  { %2082 = sst [smem:[#allocation34_spill]] %s2049_s1 }
   0x3   :  { %2083 = sst [smem:[#allocation35_spill]] %s2050_s2 }
   0x4   :  { %2084 = sst [smem:[#allocation36_spill]] %s2051_s3 }
   0x5   :  { %2085 = sst [smem:[#allocation37_spill]] %s2052_s4 }
   0x6   :  { %2086 = sst [smem:[#allocation38_spill]] %s2053_s5 }
   0x7   :  { %10 = vsyncpa [#allocation4], 0 }
   0x8   :  { %12 = vsyncpa [#allocation4 + $0x1], 0 }
   0x9   :  { %13 = vsyncpa [#allocation7], 0 }
   0xa   :  { %15 = vsyncpa [#allocation7 + $0x1], 0 }
   0xb   :  { %16 = vsyncpa [#allocation10], 0 }
   0xc   :  { %18 = vsyncpa [#allocation10 + $0x1], 0 }
   0xd   :  { %19 = vsyncpa [#allocation5], 0 }
   0xe   :  { %21 = vsyncpa [#allocation5 + $0x1], 0  ;;  %s1508_s18 = smov 0   ;;  %s1510_s19 = smov 0  }
   0xf   :  { %s1512_s20 = smov 0   ;;  %s1514_s21 = smov 0  }
  0x10   :  { %s1516_s22 = smov 0   ;;  %s1518_s23 = smov 0  }
  0x11   :  { %s1520_s24 = smov 0   ;;  %s1522_s25 = smov 0  }
  0x12   :  { %s1524_s26 = smov 0   ;;  %s1526_s27 = smov 0  }
  0x13   :  { %s1528_s28 = smov 0   ;;  %s1530_s29 = smov 0  }
  0x14   :  { %s1532_s30 = smov 0   ;;  %s1534_s6 = smov 0  }
  0x15   :  { %s1536_s7 = smov 0   ;;  %s1538_s8 = smov 0  }
  0x16 LB: > { %2087 = sst [smem:[#allocation18_spill]] %s1405_s18  ;;  %p2058_p0 = scmp.eq.s32.totalorder %s1465_s8, 0  ;;  %s1465_s8 = sphi %s1538_s8, %s27_s8   ;;  %s1461_s7 = sphi %s1536_s7, %s2170_s7   ;;  %s1457_s6 = sphi %s1534_s6, %s2169_s6   ;;  %s1453_s30 = sphi %s1532_s30, %s2168_s30   ;;  %s1449_s29 = sphi %s1530_s29, %s2167_s29   ;;  %s1445_s28 = sphi %s1528_s28, %s2166_s28   ;;  %s1441_s27 = sphi %s1526_s27, %s2165_s27   ;;  %s1437_s26 = sphi %s1524_s26, %s2164_s26   ;;  %s1433_s25 = sphi %s1522_s25, %s2163_s25   ;;  %s1429_s24 = sphi %s1520_s24, %s2162_s24   ;;  %s1425_s23 = sphi %s1518_s23, %s2161_s23   ;;  %s1421_s22 = sphi %s1516_s22, %s2160_s22   ;;  %s1417_s21 = sphi %s1514_s21, %s2155_s21   ;;  %s1413_s20 = sphi %s1512_s20, %s2159_s20   ;;  %s1409_s19 = sphi %s1510_s19, %s2154_s19   ;;  %s1405_s18 = sphi %s1508_s18, %s2153_s18  }
  0x17   : > { %2088 = sst [smem:[#allocation19_spill]] %s1409_s19  ;;  %p90_p1 = scmp.ne.s32.totalorder %s1425_s23, %s1421_s22 }
  0x18   : > { %2089 = sst [smem:[#allocation20_spill]] %s1413_s20  ;;  %p2057_p2 = scmp.lt.s32.totalorder %s1465_s8, 8 }
  0x19   : > { %2090 = sst [smem:[#allocation21_spill]] %s1421_s22  ;;  %p92_p3 = por %p90_p1, %p2058_p0 }
  0x1a   : > { %2091 = sst [smem:[#allocation22_spill]] %s1429_s24  ;;  %s2055_s11 = sand.u32 1, %s1425_s23  }
  0x1b   : > { %2092 = sst [smem:[#allocation23_spill]] %s1441_s27  ;;  %s2056_s12 = sshll.u32 %s1461_s7, 5 }
  0x1c   : > { %2093 = sst [smem:[#allocation24_spill]] %s1445_s28  ;;  %s1600_s13 = sshll.u32 %s2055_s11, 6 }
  0x1d   : > { %2094 = sst [smem:[#allocation25_spill]] %s1449_s29  ;;  %s259_s14 = sadd.s32 %s1453_s30, %s2056_s12 }
  0x1e   : > { %s862_s15 = sshll.u32 %s259_s14, 6  ;;  %s2095_s1 = sld [smem:[#allocation34_spill]] }
  0x1f   : > { %s254_s9 = scalar_lea.vmem [#allocation6], %s1600_s13  ;;  %p1615_p4 = pnand %p2057_p2, %p92_p3 }
  0x20   : > { %s262_s10 = sshll.u32 %s254_s9, 4  ;;  %s2097_s12 = sand.u32 1, %s1465_s8   ;;  %s1611_s10 = int_to_ptr.vmem [resolvable:$true] %s262_s10 }
  0x21   : > { %s2096_s11 = scalar_select %p1615_p4, 1, 0 }
  0x22   : > { %s1621_s14 = scalar_lea.sflag [#allocation7], %s2097_s12  ;;  %p1627_p6 = pneg %p1615_p4 }
  0x24   : > { %s1608_s5 = scalar_lea.hbm %s2095_s1, %s862_s15  ;;  %s1146_s28 = scalar_lea.hbm %s2095_s1, 4096 }
  0x25   : > { %s1141_s16 = scalar_lea.hbm %s1608_s5, 1024  ;;  %p1147_p9 = scmp.lt.u32.totalorder %s1608_s5, %s2095_s1 }
  0x26   : > { %p1142_p5 = scmp.ne.s32.totalorder %s1608_s5, %s1141_s16  ;;  %p1148_p10 = scmp.lt.u32.totalorder %s1146_s28, %s1141_s16 }
  0x27   : > { %p1150_p12 = scmp.lt.u32.totalorder %s1141_s16, %s1608_s5 }
  0x28   : > { %p1144_p7 = pnand %p1627_p6, %p1142_p5  ;;  %p1149_p11 = por %p1148_p10, %p1147_p9 }
  0x2a   : > { %p1145_p8 = pneg %p1144_p7  ;;  %p1151_p13 = por %p1150_p12, %p1149_p11 }
  0x2c   : > { %p1152_p1 = pnand %p1151_p13, %p1145_p8 }
  0x2e   : > { %1155 = shalt.err (!%p1152_p1)
}
  0x2f   : > { %s1156_s12 = scalar_lea.vmem %s1611_s10, 1024  ;;  %s1467_s9 = smov [#allocation6]  }
  0x30   : > { %p1157_p3 = scmp.ne.s32.totalorder %s1611_s10, %s1156_s12  ;;  %s1161_s17 = sshll.u32 %s1467_s9, 4  ;;  %s1162_s17 = int_to_ptr.vmem [resolvable:$false] %s1161_s17 }
  0x31   : > { %s1163_s27 = scalar_lea.vmem %s1162_s17, 2048  ;;  %p1164_p2 = scmp.lt.s32.totalorder %s1611_s10, %s1162_s17 }
  0x32   : > { %p1159_p5 = pnand %p1157_p3, %p1627_p6  ;;  %p1165_p0 = scmp.lt.s32.totalorder %s1163_s27, %s1156_s12 }
  0x34   : > { %p1160_p7 = pneg %p1159_p5  ;;  %p1166_p9 = por %p1165_p0, %p1164_p2 }
  0x36   : > { %p1167_p10 = pnand %p1166_p9, %p1160_p7 }
  0x38   : > { %1170 = shalt.err (!%p1167_p10)
}
  0x39   : > { %s1468_s28 = smov 128   ;;  %s1469_s29 = smov 64  }
  0x3a   : > { %s1470_s16 = smov 4   ;;  %p870_p0 = scmp.ge.s32.totalorder %s1465_s8, 1 }
  0x3b   : > { %976 = dma.hbm_to_vmem [thread:$0]  (!%p1615_p4), %s1608_s5, 1024, %s1611_s10, %s1621_s14, %s1468_s28, %s1469_s29, %s1470_s16  }
  0x3c   : > { %p329_p2 = scmp.lt.s32.totalorder %s1465_s8, 9  ;;  %s866_s9 = sshll.u32 %s1453_s30, 4 }
  0x3d   : > { %s2100_s17 = sshll.u32 %s1461_s7, 5  ;;  %s295_s1 = scalar_lea.vmem [#allocation9], %s1600_s13 }
  0x3e   : > { %p1655_p8 = pnand %p870_p0, %p329_p2  ;;  %s301_s27 = sadd.s32 %s866_s9, %s2100_s17 }
  0x3f   : > { %s304_s4 = sshll.u32 %s295_s1, 4  ;;  %s868_s18 = sshll.u32 %s301_s27, 6  ;;  %s1663_s4 = int_to_ptr.vmem [resolvable:$true] %s304_s4 }
  0x40   : > { %s2099_s12 = scalar_select %p1655_p8, 1, 0 }
  0x41   : > { %s2101_s3 = sld [smem:[#allocation36_spill]]  ;;  %s2102_s5 = sand.u32 1, %s1465_s8  }
  0x42   : > { %s1672_s10 = scalar_lea.sflag [#allocation10], %s2102_s5 }
  0x47   : > { %s1668_s2 = scalar_lea.hbm %s2101_s3, %s868_s18  ;;  %s1176_s9 = scalar_lea.hbm %s2101_s3, 4096 }
  0x48   : > { %s1171_s28 = scalar_lea.hbm %s1668_s2, 1024  ;;  %p1177_p1 = scmp.lt.u32.totalorder %s1668_s2, %s2101_s3 }
  0x49   : > { %p1172_p11 = scmp.ne.s32.totalorder %s1668_s2, %s1171_s28  ;;  %p1178_p3 = scmp.lt.u32.totalorder %s1176_s9, %s1171_s28 }
  0x4a   : > { %p1180_p7 = scmp.lt.u32.totalorder %s1171_s28, %s1668_s2 }
  0x4b   : > { %p1174_p12 = pnand %p1172_p11, %p1627_p6  ;;  %p1179_p5 = por %p1178_p3, %p1177_p1 }
  0x4d   : > { %p1175_p13 = pneg %p1174_p12  ;;  %p1181_p9 = por %p1180_p7, %p1179_p5 }
  0x4f   : > { %p1182_p10 = pnand %p1181_p9, %p1175_p13 }
  0x51   : > { %1185 = shalt.err (!%p1182_p10)
}
  0x52   : > { %s1186_s18 = scalar_lea.vmem %s1663_s4, 1024  ;;  %s1471_s20 = smov [#allocation9]  }
  0x53   : > { %p1187_p0 = scmp.ne.s32.totalorder %s1663_s4, %s1186_s18  ;;  %s1191_s27 = sshll.u32 %s1471_s20, 4  ;;  %s1192_s27 = int_to_ptr.vmem [resolvable:$false] %s1191_s27 }
  0x54   : > { %s1193_s5 = scalar_lea.vmem %s1192_s27, 2048  ;;  %p1194_p12 = scmp.lt.s32.totalorder %s1663_s4, %s1192_s27 }
  0x55   : > { %p1189_p2 = pnand %p1187_p0, %p1627_p6  ;;  %p1195_p8 = scmp.lt.s32.totalorder %s1193_s5, %s1186_s18 }
  0x57   : > { %p1190_p11 = pneg %p1189_p2  ;;  %p1196_p1 = por %p1195_p8, %p1194_p12 }
  0x59   : > { %p1197_p3 = pnand %p1196_p1, %p1190_p11 }
  0x5b   : > { %1200 = shalt.err (!%p1197_p3)
}
  0x5c   : > { %982 = dma.hbm_to_vmem [thread:$0]  (!%p1615_p4), %s1668_s2, 1024, %s1663_s4, %s1672_s10, %s1469_s29, %s1469_s29, %s1470_s16  }
  0x5d   : > { %s1700_s28 = sadd.s32 4294967295, %s1465_s8   ;;  %s854_s1 = sadd.s32 4294967294, %s1465_s8  }
  0x5e   : > { %s39_s13 = sadd.s32 1, %s1453_s30  ;;  %s42_s9 = sadd.s32 1, %s1457_s6 }
  0x5f   : > { %p40_p8 = scmp.ge.s32.totalorder %s39_s13, 2  ;;  %s46_s17 = sadd.s32 1, %s1461_s7 }
  0x60   : > { %s55_s19 = sadd.s32 1, %s1437_s26  ;;  %p62_p13 = scmp.ne.s32.totalorder %s1437_s26, %s1433_s25 }
  0x61   : > { %s2172_s13 = smov (%p40_p8, %s39_s13), 0  ;;  %s2174_s9 = smov (!%p40_p8, %s42_s9), %s1457_s6 }
  0x62   : > { %2103 = sst [smem:[#allocation26_spill]] %s2172_s13  ;;  %p68_p5 = scmp.ne.s32.totalorder %s1433_s25, %s1429_s24 }
  0x63   : > { %p44_p7 = scmp.ge.s32.totalorder %s2174_s9, 2  ;;  %p2075_p9 = scmp.eq.s32.totalorder %s1700_s28, 0 }
  0x64   : > { %p2104_p10 = scmp.eq.s32.totalorder %s1465_s8, 0  ;;  %s79_s4 = ssub.s32 %s1453_s30, %s2172_s13 }
  0x65   : > { %s2176_s9 = smov (%p44_p7, %s2174_s9), 0  ;;  %s2178_s17 = smov (!%p44_p7, %s46_s17), %s1461_s7 }
  0x66   : > { %p1720_p0 = por %p2104_p10, %p62_p13  ;;  %2106 = sst [smem:[#allocation27_spill]] %s2176_s9 }
  0x67   : > { %s51_s29 = ssub.s32 %s1457_s6, %s2176_s9  ;;  %p1736_p2 = por %p2075_p9, %p68_p5 }
  0x68   : > { %p48_p11 = scmp.ge.s32.totalorder %s2178_s17, 2  ;;  %p96_p12 = scmp.ne.s32.totalorder %s1421_s22, %s1417_s21 }
  0x69   : > { %s2107_s16 = scalar_select %p1736_p2, 1, 0 }
  0x6a   : > { %p204_p1 = scmp.eq.s32.totalorder %s1700_s28, 7  ;;  %p210_p3 = scmp.eq.s32.totalorder %s854_s1, 7 }
  0x6b   : > { %2108 = sst [smem:[#allocation28_spill]] %s2107_s16  ;;  %s2180_s17 = smov (%p48_p11, %s2178_s17), 0 }
  0x6c   : > { %2109 = sst [smem:[#allocation29_spill]] %s2180_s17  ;;  %p1747_p8 = por %p96_p12, %p2075_p9 }
  0x6d   : > { %p1754_p7 = por %p204_p1, %p62_p13  ;;  %s1760_s27 = ssub.s32 %s1461_s7, %s2180_s17 }
  0x6e   : > { %s2110_s18 = scalar_select %p1747_p8, 1, 0 }
  0x6f   : > { %s2112_s20 = scalar_select %p1754_p7, 1, 0 }
  0x70   : > { %2111 = sst [smem:[#allocation30_spill]] %s2110_s18  ;;  %p1765_p10 = por %p210_p3, %p68_p5 }
  0x71   : > { %2113 = sst [smem:[#allocation31_spill]] %s2112_s20  ;;  %s52_s5 = sor.u32 %s51_s29, %s1760_s27 }
  0x72   : > { %s2114_s21 = scalar_select %p1765_p10, 1, 0 }
  0x73   : > { %s80_s1 = sor.u32 %s79_s4, %s1760_s27  ;;  %p53_p11 = scmp.eq.s32.totalorder %s52_s5, 0 }
  0x74   : > { %2115 = sst [smem:[#allocation32_spill]] %s2114_s21  ;;  %p81_p13 = scmp.eq.s32.totalorder %s80_s1, 0 }
  0x75   : > { %s230_s3 = sand.u32 1, %s1437_s26   ;;  %s2116_s17 = sadd.s32 1, %s1425_s23 }
  0x76   : > { %s1774_s9 = scalar_select %p53_p11, %s1437_s26, %s55_s19  }
  0x77   : > { %s1779_s13 = scalar_select %p81_p13, %s1425_s23, %s2116_s17  }
  0x78   : > { %s857_s24 = sshll.u32 %s230_s3, 2  ;;  %s858_s20 = sshll.u32 %s1461_s7, 1 }
  0x79   : > { %s239_s18 = sadd.s32 %s1457_s6, %s858_s20  ;;  %s234_s22 = scalar_lea.vmem [#allocation3], %s857_s24 }
  0x7a   : > { %s243_s16 = sshll.u32 %s234_s22, 4  ;;  %s859_s21 = sshll.u32 %s239_s18, 6  ;;  %s1783_s16 = int_to_ptr.vmem [resolvable:$true] %s243_s16 }
  0x7b   : > { %s2117_s0 = sld [smem:[#allocation33_spill]]  ;;  %p2118_p5 = scmp.lt.s32.totalorder %s1465_s8, 8 }
  0x7c   : > { %s1799_s22 = sadd.s32 %s1453_s30, %s858_s20  ;;  %s231_s19 = scalar_lea.sflag [#allocation4], %s230_s3 }
  0x7d   : > { %p1794_p1 = pnand %p2118_p5, %p1720_p0  ;;  %s864_s24 = sshll.u32 %s1799_s22, 4 }
  0x7f   : > { %p1203_p11 = pneg %p1794_p1 }
  0x81   : > { %s1788_s5 = scalar_lea.hbm %s2117_s0, %s859_s21  ;;  %s1206_s1 = scalar_lea.hbm %s2117_s0, 256 }
  0x82   : > { %s1201_s18 = scalar_lea.hbm %s1788_s5, 64  ;;  %p1207_p0 = scmp.lt.u32.totalorder %s1788_s5, %s2117_s0 }
  0x83   : > { %p1202_p3 = scmp.ne.s32.totalorder %s1788_s5, %s1201_s18  ;;  %p1208_p5 = scmp.lt.u32.totalorder %s1206_s1, %s1201_s18 }
  0x84   : > { %p1210_p10 = scmp.lt.u32.totalorder %s1201_s18, %s1788_s5 }
  0x85   : > { %p1204_p13 = pnand %p1203_p11, %p1202_p3  ;;  %p1209_p12 = por %p1208_p5, %p1207_p0 }
  0x87   : > { %p1205_p9 = pneg %p1204_p13  ;;  %p1211_p7 = por %p1210_p10, %p1209_p12 }
  0x89   : > { %p1212_p8 = pnand %p1211_p7, %p1205_p9 }
  0x8b   : > { %1215 = shalt.err (!%p1212_p8)
}
  0x8c   : > { %s1216_s3 = scalar_lea.vmem %s1783_s16, 64  ;;  %s1472_s20 = smov [#allocation3]  }
  0x8d   : > { %p1217_p3 = scmp.ne.s32.totalorder %s1783_s16, %s1216_s3  ;;  %s1221_s2 = sshll.u32 %s1472_s20, 4  ;;  %s1222_s2 = int_to_ptr.vmem [resolvable:$false] %s1221_s2 }
  0x8e   : > { %s1223_s21 = scalar_lea.vmem %s1222_s2, 128  ;;  %p1224_p4 = scmp.lt.s32.totalorder %s1783_s16, %s1222_s2 }
  0x8f   : > { %p1219_p13 = pnand %p1217_p3, %p1203_p11  ;;  %p1225_p0 = scmp.lt.s32.totalorder %s1223_s21, %s1216_s3 }
  0x91   : > { %p1220_p2 = pneg %p1219_p13  ;;  %p1226_p5 = por %p1225_p0, %p1224_p4 }
  0x93   : > { %p1227_p10 = pnand %p1226_p5, %p1220_p2 }
  0x95   : > { %1230 = shalt.err (!%p1227_p10)
}
  0x96   : > { %973 = dma.hbm_to_vmem [thread:$0]  (!%p1794_p1), %s1788_s5, 64, %s1783_s16, %s231_s19  }
  0x97   : > { %s2120_s29 = sld [smem:[#allocation35_spill]]  ;;  %s2122_s0 = sand.u32 1, %s1425_s23  }
  0x98   : > { %s275_s3 = scalar_lea.vmem [#allocation8], %s2122_s0 }
  0x99   : > { %s284_s2 = sshll.u32 %s275_s3, 4  ;;  %s285_s2 = int_to_ptr.vmem [resolvable:$true] %s284_s2 }
  0x9d   : > { %s2121_s4 = smov %s2120_s29  ;;  %s1832_s20 = scalar_lea.hbm %s2120_s29, %s864_s24 }
  0x9e   : > { %s1231_s17 = scalar_lea.hbm %s1832_s20, 16  ;;  %s1236_s22 = scalar_lea.hbm %s2121_s4, 64 }
  0x9f   : > { %p1232_p4 = scmp.ne.s32.totalorder %s1832_s20, %s1231_s17  ;;  %p1237_p8 = scmp.lt.u32.totalorder %s1832_s20, %s2121_s4 }
  0xa0   : > { %p1238_p7 = scmp.lt.u32.totalorder %s1236_s22, %s1231_s17  ;;  %p1240_p1 = scmp.lt.u32.totalorder %s1231_s17, %s1832_s20 }
  0xa1   : > { %p1234_p9 = pnand %p1232_p4, %p1627_p6 }
  0xa2   : > { %p1239_p12 = por %p1238_p7, %p1237_p8 }
  0xa3   : > { %p1235_p2 = pneg %p1234_p9 }
  0xa4   : > { %p1241_p11 = por %p1240_p1, %p1239_p12 }
  0xa6   : > { %p1242_p3 = pnand %p1241_p11, %p1235_p2 }
  0xa8   : > { %1245 = shalt.err (!%p1242_p3)
}
  0xa9   : > { %s1246_s0 = scalar_lea.vmem %s285_s2, 16  ;;  %s1473_s21 = smov [#allocation8]  }
  0xaa   : > { %p1247_p13 = scmp.ne.s32.totalorder %s285_s2, %s1246_s0  ;;  %s1251_s18 = sshll.u32 %s1473_s21, 4  ;;  %s1252_s18 = int_to_ptr.vmem [resolvable:$false] %s1251_s18 }
  0xab   : > { %s1253_s1 = scalar_lea.vmem %s1252_s18, 32  ;;  %p1254_p10 = scmp.lt.s32.totalorder %s285_s2, %s1252_s18 }
  0xac   : > { %p1249_p0 = pnand %p1247_p13, %p1627_p6  ;;  %p1255_p4 = scmp.lt.s32.totalorder %s1253_s1, %s1246_s0 }
  0xae   : > { %p1250_p5 = pneg %p1249_p0  ;;  %p1256_p9 = por %p1255_p4, %p1254_p10 }
  0xb0   : > { %p1257_p7 = pnand %p1256_p9, %p1250_p5 }
  0xb2   : > { %1260 = shalt.err (!%p1257_p7)
}
  0xb3   : > { %p2123_p8 = scmp.ne.s32.totalorder %s2096_s11, 0  ;;  %s2124_s29 = sld [smem:[#allocation20_spill]] }
  0xb4   : > { %s2125_s3 = sld [smem:[#allocation19_spill]]  ;;  %s2126_s15 = sld [smem:[#allocation18_spill]] }
  0xb5   : > { %979 = dma.hbm_to_vmem [thread:$0]  (!%p2123_p8), %s1832_s20, 16, %s285_s2, %s1621_s14  }
  0xb6   : > { %p2127_p6 = scmp.eq.s32.totalorder %s1760_s27, 0  ;;  %s869_s5 = sshll.u32 %s1461_s7, 4 }
  0xb7   : > { %p2128_p1 = scmp.eq.s32.totalorder %s1465_s8, 0  ;;  %p2129_p3 = scmp.eq.s32.totalorder %s1700_s28, 0 }
  0xb8   : > { %s2131_s0 = sld [smem:[#allocation37_spill]]  ;;  %p2132_p0 = scmp.lt.s32.totalorder %s1465_s8, 8 }
  0xb9   : > { %s165_s17 = sadd.s32 1, %s2124_s29  ;;  %s316_s11 = sand.u32 1, %s2124_s29  }
  0xba   : > { %s1858_s16 = scalar_select %p2127_p6, %s2124_s29, %s165_s17  }
  0xbb   : > { %p172_p2 = scmp.ne.s32.totalorder %s2124_s29, %s2125_s3  ;;  %p178_p12 = scmp.ne.s32.totalorder %s2125_s3, %s2126_s15 }
  0xbc   : > { %s317_s14 = scalar_lea.vmem [#allocation11], %s316_s11 }
  0xbd   : > { %p174_p11 = por %p172_p2, %p2128_p1  ;;  %p1870_p13 = por %p178_p12, %p2129_p3 }
  0xbe   : > { %s1877_s21 = scalar_lea.hbm %s2131_s0, %s869_s5  ;;  %s324_s27 = sshll.u32 %s317_s14, 4  ;;  %s325_s27 = int_to_ptr.vmem [resolvable:$true] %s324_s27 }
  0xbf   : > { %s2130_s22 = scalar_select %p1870_p13, 1, 0 }
  0xc0   : > { %p1881_p5 = pnand %p2132_p0, %p174_p11  ;;  %s1261_s2 = scalar_lea.hbm %s1877_s21, 16 }
  0xc1   : > { %p1262_p10 = scmp.ne.s32.totalorder %s1877_s21, %s1261_s2  ;;  %s1266_s29 = scalar_lea.hbm %s2131_s0, 32 }
  0xc2   : > { %p1263_p4 = pneg %p1881_p5  ;;  %p1267_p8 = scmp.lt.u32.totalorder %s1877_s21, %s2131_s0 }
  0xc3   : > { %p1268_p6 = scmp.lt.u32.totalorder %s1266_s29, %s1261_s2  ;;  %p1270_p12 = scmp.lt.u32.totalorder %s1261_s2, %s1877_s21 }
  0xc4   : > { %p1264_p9 = pnand %p1263_p4, %p1262_p10 }
  0xc5   : > { %p1269_p2 = por %p1268_p6, %p1267_p8 }
  0xc6   : > { %p1265_p7 = pneg %p1264_p9 }
  0xc7   : > { %p1271_p1 = por %p1270_p12, %p1269_p2 }
  0xc9   : > { %p1272_p11 = pnand %p1271_p1, %p1265_p7 }
  0xcb   : > { %1275 = shalt.err (!%p1272_p11)
}
  0xcc   : > { %s1276_s17 = scalar_lea.vmem %s325_s27, 16  ;;  %s1474_s11 = smov [#allocation11]  }
  0xcd   : > { %p1277_p3 = scmp.ne.s32.totalorder %s325_s27, %s1276_s17  ;;  %s1281_s5 = sshll.u32 %s1474_s11, 4  ;;  %s1282_s5 = int_to_ptr.vmem [resolvable:$false] %s1281_s5 }
  0xce   : > { %s1283_s19 = scalar_lea.vmem %s1282_s5, 32  ;;  %p1284_p9 = scmp.lt.s32.totalorder %s325_s27, %s1282_s5 }
  0xcf   : > { %p1279_p0 = pnand %p1277_p3, %p1263_p4  ;;  %p1285_p13 = scmp.lt.s32.totalorder %s1283_s19, %s1276_s17 }
  0xd1   : > { %p1280_p10 = pneg %p1279_p0  ;;  %p1286_p6 = por %p1285_p13, %p1284_p9 }
  0xd3   : > { %p1287_p8 = pnand %p1286_p6, %p1280_p10 }
  0xd5   : > { %1290 = shalt.err (!%p1287_p8)
}
  0xd6   : > { %985 = dma.hbm_to_vmem [thread:$0]  (!%p1881_p5), %s1877_s21, 16, %s325_s27, %s1672_s10  }
  0xd7   : > { %p2134_p7 = scmp.ne.s32.totalorder %s2099_s12, 0 }
  0xd8   : > { %s2135_s24 = sld [smem:[#allocation28_spill]] (!%p2134_p7)  ;;  %s1910_s14 = sand.u32 (!%p2134_p7), 1, %s1433_s25  }
  0xd9   : > { %333 = sbr.rel (%p2134_p7) target bundleno = 764 (0x2fc), region = 40  ;;  %s871_s2 = sshll.u32 (!%p2134_p7), %s1910_s14, 2 }
  0xda   : > { %s336_s18 = scalar_lea.sflag (!%p2134_p7), [#allocation4], %s1910_s14  ;;  %s1914_s1 = scalar_lea.vmem (!%p2134_p7), [#allocation3], %s871_s2 }
  0xde   : > { %p2136_p13 = scmp.ne.s32.totalorder (!%p2134_p7), %s2135_s24, 0 }
  0xe0   : > { %1384 = dma.done.wait (%p2136_p13), %s336_s18, 64  }
  0xe1   : > { %1386 = vsyncadd (%p2136_p13), %s336_s18, 4294967232  ;;  %s2137_s10 = sld [smem:[#allocation21_spill]]  ;;  %s2138_s21 = sld [smem:[#allocation30_spill]] }
  0xe2   : > { %s344_s12 = sand.u32 1, %s1700_s28  }
  0xe3   : > { %s345_s29 = scalar_lea.sflag [#allocation7], %s344_s12 }
  0xe7   : > { %s346_s27 = sand.u32 1, %s2137_s10   ;;  %p2139_p5 = scmp.ne.s32.totalorder %s2138_s21, 0 }
  0xe8   : > { %s872_s20 = sshll.u32 %s346_s27, 6 }
  0xe9   : > { %s1922_s3 = scalar_lea.vmem [#allocation6], %s872_s20 }
  0xea   : > { %1388 = dma.done.wait (%p2139_p5), %s345_s29, 1040  }
  0xeb   : > { %1390 = vsyncadd (%p2139_p5), %s345_s29, 4294966256  ;;  %s1928_s15 = scalar_lea.vmem [#allocation8], %s346_s27  ;;  %s362_s17 = scalar_lea.sflag [#allocation10], %s344_s12 }
  0xec   : > { %s1930_s11 = scalar_lea.vmem [#allocation9], %s872_s20 }
  0xed   : > { %1392 = dma.done.wait (%p2139_p5), %s362_s17, 1024  }
  0xee   : > { %1394 = vsyncadd (%p2139_p5), %s362_s17, 4294966272  ;;  %s2140_s28 = sld [smem:[#allocation19_spill]]  ;;  %p2141_p4 = scmp.ne.s32.totalorder %s2130_s22, 0 }
  0xf4   : > { %s372_s5 = sand.u32 1, %s2140_s28  }
  0xf5   : > { %s373_s19 = scalar_lea.vmem [#allocation11], %s372_s5 }
  0xf6   : > { %1396 = dma.done.wait (%p2141_p4), %s362_s17, 16  }
  0xf7   : > { %1398 = vsyncadd (%p2141_p4), %s362_s17, 4294967280  ;;  %s874_s24 = sshll.u32 %s1910_s14, 3  ;;  %s2142_s18 = sld [smem:[#allocation23_spill]] }
  0xf8   : > { %s1942_s2 = scalar_lea.vmem [#allocation12], %s874_s24 }
  0xfd   : > { %p875_p2 = scmp.ne.s32.totalorder %s2142_s18, 0 }
  0xfe   : > { %v876_v0 = vld [vmem:[%s373_s19] ss:$0 sm:$0xff] (!%p875_p2) }
  0xff   : > { %423 = sbr.rel (%p875_p2) target bundleno = 262 (0x106), region = 64  ;;  %431 = vst [vmem:[#allocation2] sm:$0xff] (!%p875_p2), %v876_v0 }
 0x106 PF: > { %v1125_v1 = vld [vmem:[%s1922_s3] sm:$0xff]   ;;  %v1475_v2 = vmov 0.0   ;;  %v1126_v3 = vld [vmem:[%s1922_s3 + $0x8] sm:$0xff]   ;;  %vm1476_vm0 = vmmov 0   ;;  %v1127_v4 = vld [vmem:[%s1922_s3 + $0x10] sm:$0xff]   ;;  %s2143_s22 = sld [smem:[#allocation23_spill]] }
 0x107   : > { %918 = vmatprep.subr.bf16.mxu0 %v1475_v2  ;;  %938 = vmatprep.subr.bf16.mxu1 %v1475_v2  ;;  %v1133_v5 = vld [vmem:[%s1930_s11] sm:$0xff]   ;;  %v1128_v6 = vld [vmem:[%s1922_s3 + $0x18] sm:$0xff]   ;;  %v1134_v7 = vld [vmem:[%s1930_s11 + $0x8] sm:$0xff]  }
 0x108   : > { %919 = vmatpush3.bf16.msra.mxu0 %v1125_v1  ;;  %934 = vmatprep.mubr.msk.bf16.mxu0 %vm1476_vm0, %v1475_v2  ;;  %v1129_v8 = vld [vmem:[%s1922_s3 + $0x20] sm:$0xff]   ;;  %v1135_v9 = vld [vmem:[%s1930_s11 + $0x10] sm:$0xff]   ;;  %v1130_v10 = vld [vmem:[%s1922_s3 + $0x28] sm:$0xff]  }
 0x109   : > { %920 = vmatprep.subr.bf16.mxu0 %v1475_v2  ;;  %954 = vmatprep.mubr.msk.bf16.mxu1 %vm1476_vm0, %v1475_v2  ;;  %v1136_v11 = vld [vmem:[%s1930_s11 + $0x18] sm:$0xff]   ;;  %v1131_v12 = vld [vmem:[%s1922_s3 + $0x30] sm:$0xff]   ;;  %v1137_v13 = vld [vmem:[%s1930_s11 + $0x20] sm:$0xff]  }
 0x10a   : > { %939 = vmatpush3.bf16.msra.mxu1 %v1133_v5  ;;  %v1132_v14 = vld [vmem:[%s1922_s3 + $0x38] sm:$0xff]   ;;  %v1138_v15 = vld [vmem:[%s1930_s11 + $0x28] sm:$0xff]  }
 0x10b   : > { %940 = vmatprep.subr.bf16.mxu1 %v1475_v2  ;;  %v432_v16 = vld [vmem:[%s1914_s1] sm:$0xf]  ;;  %v877_v19 = vld [vmem:[%s1928_s15] ss:$0 sm:$0xff] }
 0x10c   : > { %921 = vmatpush3.bf16.msra.mxu0 %v1126_v3  ;;  %v1139_v17 = vld [vmem:[%s1930_s11 + $0x30] sm:$0xff]   ;;  %v1140_v18 = vld [vmem:[%s1930_s11 + $0x38] sm:$0xff]   ;;  %p894_p12 = scmp.ne.s32.totalorder %s2143_s22, 1 }
 0x10d   : > { %922 = vmatprep.subr.bf16.mxu0 %v1475_v2  ;;  %v545_v27 = vld [vmem:[#allocation2] sm:$0xff] }
 0x10e   : > { %941 = vmatpush3.bf16.msra.mxu1 %v1134_v7 }
 0x10f   : > { %942 = vmatprep.subr.bf16.mxu1 %v1475_v2 }
 0x110   : > { %923 = vmatpush3.bf16.msra.mxu0 %v1127_v4 }
 0x111   : > { %924 = vmatprep.subr.bf16.mxu0 %v1475_v2 }
 0x112   : > { %943 = vmatpush3.bf16.msra.mxu1 %v1135_v9 }
 0x113   : > { %944 = vmatprep.subr.bf16.mxu1 %v1475_v2 }
 0x114   : > { %925 = vmatpush3.bf16.msra.mxu0 %v1128_v6 }
 0x115   : > { %926 = vmatprep.subr.bf16.mxu0 %v1475_v2 }
 0x116   : > { %945 = vmatpush3.bf16.msra.mxu1 %v1136_v11 }
 0x117   : > { %946 = vmatprep.subr.bf16.mxu1 %v1475_v2 }
 0x118   : > { %927 = vmatpush3.bf16.msra.mxu0 %v1129_v8 }
 0x119   : > { %928 = vmatprep.subr.bf16.mxu0 %v1475_v2 }
 0x11a   : > { %947 = vmatpush3.bf16.msra.mxu1 %v1137_v13 }
 0x11b   : > { %948 = vmatprep.subr.bf16.mxu1 %v1475_v2 }
 0x11c   : > { %929 = vmatpush3.bf16.msra.mxu0 %v1130_v10 }
 0x11d   : > { %930 = vmatprep.subr.bf16.mxu0 %v1475_v2 }
 0x11e   : > { %949 = vmatpush3.bf16.msra.mxu1 %v1138_v15 }
 0x11f   : > { %950 = vmatprep.subr.bf16.mxu1 %v1475_v2 }
 0x120   : > { %931 = vmatpush3.bf16.msra.mxu0 %v1131_v12 }
 0x121   : > { %932 = vmatprep.subr.bf16.mxu0 %v1475_v2 }
 0x122   : > { %951 = vmatpush3.bf16.msra.mxu1 %v1139_v17 }
 0x123   : > { %952 = vmatprep.subr.bf16.mxu1 %v1475_v2 }
 0x124   : > { %933 = vmatpush3.bf16.msra.mxu0 %v1132_v14 }
 0x126   : > { %953 = vmatpush3.bf16.msra.mxu1 %v1140_v18 }
 0x127   : > { %935 = vmatmul.mubr.bf16.vlgmr.msra.gmra.mrb[0].mxu0 %v432_v16 }
 0x1fa   : > { %v538_v20 = vpop.f32.mrb[0].mxu0 }
 0x1fb   : > { %v539_v21 = vadd.f32 %v877_v19, %v538_v20  ;;  %v936_v22 = vpop.f32.mrb[1].mxu0 }
 0x1fc   : > { %v541_v23 = vpop.f32.mrb[2].mxu0 }
 0x1fd   : > { %v544_v24 = vmax.f32 %v539_v21, 0.0  ;;  %v937_v25 = vpop.f32.mrb[3].mxu0 }
 0x1ff   : > { %v546_v26 = vpack.c.bf16 %v544_v24, %v544_v24 }
 0x201   : > { %955 = vmatmul.mubr.bf16.vlgmr.msra.gmra.mrb[0].mxu1 %v546_v26 }
 0x2d1   : > { %656 = sbr.rel (%p894_p12) target bundleno = 736 (0x2e0), region = 68 }
 0x2d4   : > { %v645_v28 = vpop.f32.mrb[0].mxu1 }
 0x2d5   : > { %v651_v29 = vadd.f32 %v645_v28, %v545_v27  ;;  %v956_v30 = vpop.f32.mrb[1].mxu1 }
 0x2d6   : > { %v648_v31 = vpop.f32.mrb[2].mxu1 }
 0x2d7   : > { %652 = vst [vmem:[#allocation2] sm:$0xff] %v651_v29  ;;  %v957_v32 = vpop.f32.mrb[3].mxu1 }
 0x2de   : > { %v657_v33 = vld [vmem:[#allocation2] sm:$0xff] }
 0x2df   : > { %658 = vst [vmem:[%s1942_s2] sm:$0xff] %v657_v33 }
 0x2e0 PF: > { %s2144_s1 = sld [smem:[#allocation25_spill]]  ;;  %s2145_s10 = sld [smem:[#allocation24_spill]] }
 0x2e1   : > { %s2146_s21 = sld [smem:[#allocation31_spill]]  ;;  %s675_s20 = sshll.u32 %s1942_s2, 4  ;;  %s1968_s20 = int_to_ptr.vmem [resolvable:$true] %s675_s20 }
 0x2e2   : > { %s2147_s17 = sld [smem:[#allocation38_spill]]  ;;  %s660_s28 = scalar_lea.sflag [#allocation5], %s1910_s14 }
 0x2e3   : > { %s1291_s5 = scalar_lea.vmem %s1968_s20, 128  ;;  %s1477_s19 = smov [#allocation12]  }
 0x2e4   : > { %p1292_p1 = scmp.ne.s32.totalorder %s1968_s20, %s1291_s5  ;;  %s1295_s24 = sshll.u32 %s1477_s19, 4  ;;  %s1296_s24 = int_to_ptr.vmem [resolvable:$false] %s1295_s24 }
 0x2e5   : > { %s1297_s2 = scalar_lea.vmem %s1296_s24, 256  ;;  %p1298_p10 = scmp.lt.s32.totalorder %s1968_s20, %s1296_s24 }
 0x2e6   : > { %s896_s12 = sshll.u32 %s2144_s1, 1  ;;  %p1299_p9 = scmp.lt.s32.totalorder %s1297_s2, %s1291_s5 }
 0x2e7   : > { %s671_s27 = sadd.s32 %s2145_s10, %s896_s12  ;;  %p2148_p11 = scmp.ne.s32.totalorder %s2146_s21, 0 }
 0x2e8   : > { %s897_s29 = sshll.u32 %s671_s27, 7  ;;  %p1300_p6 = por %p1299_p9, %p1298_p10 }
 0x2e9   : > { %s673_s11 = scalar_lea.hbm %s2147_s17, %s897_s29  ;;  %p1293_p3 = pnand %p1292_p1, %p2148_p11 }
 0x2eb   : > { %p1294_p0 = pneg %p1293_p3 }
 0x2ed   : > { %p1301_p8 = pnand %p1300_p6, %p1294_p0 }
 0x2ef   : > { %1304 = shalt.err (!%p1301_p8)
}
 0x2f0   : > { %s1305_s18 = scalar_lea.hbm %s673_s11, 128  ;;  %s1309_s1 = scalar_lea.hbm %s2147_s17, 512 }
 0x2f1   : > { %p1306_p7 = scmp.ne.s32.totalorder %s673_s11, %s1305_s18  ;;  %p1310_p4 = scmp.lt.u32.totalorder %s673_s11, %s2147_s17 }
 0x2f2   : > { %p1311_p2 = scmp.lt.u32.totalorder %s1309_s1, %s1305_s18  ;;  %p1313_p1 = scmp.lt.u32.totalorder %s1305_s18, %s673_s11 }
 0x2f3   : > { %p1307_p13 = pnand %p1306_p7, %p2148_p11 }
 0x2f4   : > { %p1312_p12 = por %p1311_p2, %p1310_p4 }
 0x2f5   : > { %p1308_p5 = pneg %p1307_p13 }
 0x2f6   : > { %p1314_p3 = por %p1313_p1, %p1312_p12 }
 0x2f8   : > { %p1315_p0 = pnand %p1314_p3, %p1308_p5 }
 0x2fa   : > { %1318 = shalt.err (!%p1315_p0)
}
 0x2fb   : > { %968 = dma.vmem_to_hbm [thread:$0]  (%p2148_p11), %s1968_s20, 128, %s673_s11, %s660_s28  }
 0x2fc PF: > { %s2149_s27 = sld [smem:[#allocation22_spill]]  ;;  %s2150_s29 = sld [smem:[#allocation32_spill]] }
 0x2fd   : > { %p991_p10 = scmp.ge.s32.totalorder %s1465_s8, 2 }
 0x302   : > { %s687_s3 = sand.u32 1, %s2149_s27   ;;  %p2151_p9 = scmp.ne.s32.totalorder %s2150_s29, 0 }
 0x303   : > { %s688_s15 = scalar_lea.sflag [#allocation5], %s687_s3 }
 0x304   : > { %p987_p6 = pnand %p991_p10, %p2151_p9 }
 0x306   : > { %1400 = dma.done.wait (!%p987_p6), %s688_s15, 128  }
 0x307   : > { %1402 = vsyncadd (!%p987_p6), %s688_s15, 4294967168  ;;  %s27_s8 = sadd.s32 1, %s1465_s8   ;;  %s2153_s18 = sld [smem:[#allocation19_spill]] }
 0x308   : > { %p1995_p8 = scmp.ge.s32.totalorder %s27_s8, 10   ;;  %s2154_s19 = sld [smem:[#allocation20_spill]] }
 0x309   : > { %s2155_s21 = sld [smem:[#allocation21_spill]]  ;;  %s2156_s11 = sld [smem:[#allocation26_spill]] }
 0x30a   : > { %s2157_s2 = sld [smem:[#allocation27_spill]]  ;;  %s2158_s14 = sld [smem:[#allocation29_spill]] }
 0x30b   : > { %s2159_s20 = smov %s1858_s16  ;;  %s2160_s22 = smov %s1425_s23 }
 0x30c   : > { %s2161_s23 = smov %s1779_s13  ;;  %s2162_s24 = smov %s1433_s25 }
 0x30d   : > { %s2163_s25 = smov %s1437_s26  ;;  %s2164_s26 = smov %s1774_s9 }
 0x30e   : > { %s2165_s27 = smov %s1453_s30  ;;  %s2166_s28 = smov %s1457_s6 }
 0x30f   : > { %s2167_s29 = smov %s1461_s7  ;;  %s2168_s30 = smov %s2156_s11 }
 0x310   : > { %s2169_s6 = smov %s2157_s2  ;;  %s2170_s7 = smov %s2158_s14 }
 0x311   :  { %26 = sbr.rel (!%p1995_p8) target bundleno = 22 (0x16), region = 141 }
 0x318   :  { %693 = vsyncpa [#allocation4], 1 }
 0x319   :  { %695 = vsyncpa [#allocation4 + $0x1], 1 }
 0x31a   :  { %696 = vsyncpa [#allocation7], 1 }
 0x31b   :  { %698 = vsyncpa [#allocation7 + $0x1], 1 }
 0x31c   :  { %699 = vsyncpa [#allocation10], 1 }
 0x31d   :  { %701 = vsyncpa [#allocation10 + $0x1], 1 }
 0x31e   :  { %702 = vsyncpa [#allocation5], 1 }
 0x31f   :  { %704 = vsyncpa [#allocation5 + $0x1], 1 }

</bundles_post_ra>
